<compile_context>
chip_gen: v7x
topology: tpu7x:2x2x1
jax: 0.10.0
libtpu: 0.0.40
codegen_flags: <defaults>
</compile_context>

<pallas_src>
import functools

import jax
import jax.numpy as jnp
import numpy as np
from jax import lax
from jax.experimental import pallas as pl
from jax.experimental.pallas import tpu as pltpu

K = 3  # conv kernel size of the wrapped submodule


def _shortcut_conv_kernel(x_ref, w_ref, b_ref, mask_ref, o_ref, *, W):
    # x_ref:    (1, C, H*W)      image, channels on sublanes, pixels on lanes
    # w_ref:    (Cout, 9*C)      fused 3x3 weights (tap-major, then Cin)
    # b_ref:    (Cout, 1)        bias
    # mask_ref: (9, H*W)         1.0 where the tap is inside the image, else 0.0
    # o_ref:    (1, Cout, H*W)   output = x + conv(x)
    HW = x_ref.shape[2]

    x = x_ref[0]                 # (C, HW)
    masks = mask_ref[...]        # (9, HW)

    # Build the 9 shifted taps with circular lane rolls + border masks
    # (equivalent to zero 'same' padding), then fuse them into one deep matmul.
    taps = []
    t = 0
    for dy in (-1, 0, 1):
        for dx in (-1, 0, 1):
            s = dy * W + dx
            if s == 0:
                shifted = x
            else:
                shifted = pltpu.roll(x, (-s) % HW, axis=1)      # x[p + s]
                shifted = shifted * masks[t:t + 1, :]           # zero-pad edges
            taps.append(shifted)
            t += 1
    patch = jnp.concatenate(taps, axis=0)                        # (9*C, HW)

    conv = jnp.dot(w_ref[...], patch,
                   preferred_element_type=jnp.float32)           # (Cout, HW)

    out = x.astype(jnp.float32) + conv + b_ref[...].astype(jnp.float32)
    o_ref[0] = out.astype(o_ref.dtype)


def shortcut_block(x_nchw, weight_oihw, bias):
    """output = x + Conv2d(x) (3x3, padding=1), matching PyTorch semantics."""
    N, C, H, W = x_nchw.shape
    Cout, Cin, KH, KW = weight_oihw.shape
    assert Cin == C and Cout == C, "ShortcutBlock residual requires Cin == Cout == C"
    assert KH == K and KW == K
    HW = H * W

    # NCHW kept as-is; flattening H*W is a layout-preserving (free) reshape.
    x_flat = x_nchw.reshape(N, C, HW)

    # OIHW -> (Cout, 9*Cin), tap-major (dy, dx) then Cin: matches kernel order.
    w_all = jnp.transpose(weight_oihw, (0, 2, 3, 1)).reshape(Cout, KH * KW * Cin)
    b = bias.reshape(Cout, 1)

    # Precompute the 9 border-validity masks (tiny constant, built host-side).
    rows = np.repeat(np.arange(H), W)
    cols = np.tile(np.arange(W), H)
    m = []
    for dy in (-1, 0, 1):
        for dx in (-1, 0, 1):
            valid = ((rows + dy >= 0) & (rows + dy < H) &
                     (cols + dx >= 0) & (cols + dx < W))
            m.append(valid.astype(np.float32))
    tap_mask = jnp.asarray(np.stack(m, axis=0))                  # (9, HW)

    kernel = functools.partial(_shortcut_conv_kernel, W=W)

    out_flat = pl.pallas_call(
        kernel,
        out_shape=jax.ShapeDtypeStruct((N, Cout, HW), x_nchw.dtype),
        grid_spec=pltpu.PrefetchScalarGridSpec(
            num_scalar_prefetch=0,
            grid=(N,),
            in_specs=[
                pl.BlockSpec((1, C, HW), lambda n: (n, 0, 0)),
                pl.BlockSpec((Cout, KH * KW * Cin), lambda n: (0, 0)),
                pl.BlockSpec((Cout, 1), lambda n: (0, 0)),
                pl.BlockSpec((KH * KW, HW), lambda n: (0, 0)),
            ],
            out_specs=pl.BlockSpec((1, Cout, HW), lambda n: (n, 0, 0)),
        ),
        compiler_params=pltpu.CompilerParams(
            dimension_semantics=("parallel",),
        ),
    )(x_flat, w_all, b, tap_mask)

    return out_flat.reshape(N, Cout, H, W)


def _reference(x_nchw, weight_oihw, bias):
    conv = lax.conv_general_dilated(
        x_nchw, weight_oihw,
        window_strides=(1, 1), padding="SAME",
        dimension_numbers=("NCHW", "OIHW", "NCHW"),
    ) + bias[None, :, None, None]
    return x_nchw + conv


if __name__ == "__main__":
    key = jax.random.PRNGKey(0)
    kx, kw, kb = jax.random.split(key, 3)

    N, C, H, W = 2, 4, 16, 16
    x = jax.random.normal(kx, (N, C, H, W), dtype=jnp.float32)
    weight = jax.random.normal(kw, (C, C, K, K), dtype=jnp.float32) * 0.1
    bias = jax.random.normal(kb, (C,), dtype=jnp.float32) * 0.1

    out = shortcut_block(x, weight, bias)
    out = jax.block_until_ready(out)

    ref = _reference(x, weight, bias)
    assert out.shape == (N, C, H, W)
    assert jnp.allclose(out, ref, atol=1e-4, rtol=1e-4)

    print("KERNEL_OK")
</pallas_src>

<mosaic_0001>
module attributes {stable_mosaic.version = 11 : i64} {
  func.func @_shortcut_conv_kernel(%arg0: i32, %arg1: memref<1x4x256xf32, #tpu.memory_space<vmem>>, %arg2: memref<4x36xf32, #tpu.memory_space<vmem>>, %arg3: memref<4x1xf32, #tpu.memory_space<vmem>>, %arg4: memref<9x256xf32, #tpu.memory_space<vmem>>, %arg5: memref<1x4x256xf32, #tpu.memory_space<vmem>>) attributes {dimension_semantics = [#tpu.dimension_semantics<parallel>], iteration_bounds = array<i64: 2>, scalar_prefetch = 0 : i64, scratch_operands = 0 : i64, tpu.core_type = #tpu.core_type<tc>, window_params = [{transform_indices = @transform_0, window_bounds = array<i64: 1, 4, 256>}, {pipeline_mode = #tpu.pipeline_mode<synchronous>, transform_indices = @transform_1, window_bounds = array<i64: 4, 36>}, {pipeline_mode = #tpu.pipeline_mode<synchronous>, transform_indices = @transform_2, window_bounds = array<i64: 4, 1>}, {pipeline_mode = #tpu.pipeline_mode<synchronous>, transform_indices = @transform_3, window_bounds = array<i64: 9, 256>}, {transform_indices = @transform_4, window_bounds = array<i64: 1, 4, 256>}]} {
    %c0 = arith.constant 0 : index
    %c0_0 = arith.constant 0 : index
    %c0_1 = arith.constant 0 : index
    %0 = vector.load %arg1[%c0, %c0_0, %c0_1] : memref<1x4x256xf32, #tpu.memory_space<vmem>>, vector<1x4x256xf32>
    %1 = vector.shape_cast %0 : vector<1x4x256xf32> to vector<4x256xf32>
    %c0_2 = arith.constant 0 : index
    %c0_3 = arith.constant 0 : index
    %2 = vector.load %arg4[%c0_2, %c0_3] : memref<9x256xf32, #tpu.memory_space<vmem>>, vector<9x256xf32>
    %c17_i32 = arith.constant 17 : i32
    %3 = tpu.dynamic_rotate %1 by %c17_i32 dim 1 : vector<4x256xf32>, i32 -> vector<4x256xf32>
    %4 = vector.extract_strided_slice %2 {offsets = [0, 0], sizes = [1, 256], strides = [1, 1]} : vector<9x256xf32> to vector<1x256xf32>
    %5 = vector.broadcast %4 : vector<1x256xf32> to vector<4x256xf32>
    %6 = arith.mulf %3, %5 : vector<4x256xf32>
    %c16_i32 = arith.constant 16 : i32
    %7 = tpu.dynamic_rotate %1 by %c16_i32 dim 1 : vector<4x256xf32>, i32 -> vector<4x256xf32>
    %8 = vector.extract_strided_slice %2 {offsets = [1, 0], sizes = [1, 256], strides = [1, 1]} : vector<9x256xf32> to vector<1x256xf32>
    %9 = vector.broadcast %8 : vector<1x256xf32> to vector<4x256xf32>
    %10 = arith.mulf %7, %9 : vector<4x256xf32>
    %c15_i32 = arith.constant 15 : i32
    %11 = tpu.dynamic_rotate %1 by %c15_i32 dim 1 : vector<4x256xf32>, i32 -> vector<4x256xf32>
    %12 = vector.extract_strided_slice %2 {offsets = [2, 0], sizes = [1, 256], strides = [1, 1]} : vector<9x256xf32> to vector<1x256xf32>
    %13 = vector.broadcast %12 : vector<1x256xf32> to vector<4x256xf32>
    %14 = arith.mulf %11, %13 : vector<4x256xf32>
    %c1_i32 = arith.constant 1 : i32
    %15 = tpu.dynamic_rotate %1 by %c1_i32 dim 1 : vector<4x256xf32>, i32 -> vector<4x256xf32>
    %16 = vector.extract_strided_slice %2 {offsets = [3, 0], sizes = [1, 256], strides = [1, 1]} : vector<9x256xf32> to vector<1x256xf32>
    %17 = vector.broadcast %16 : vector<1x256xf32> to vector<4x256xf32>
    %18 = arith.mulf %15, %17 : vector<4x256xf32>
    %c255_i32 = arith.constant 255 : i32
    %19 = tpu.dynamic_rotate %1 by %c255_i32 dim 1 : vector<4x256xf32>, i32 -> vector<4x256xf32>
    %20 = vector.extract_strided_slice %2 {offsets = [5, 0], sizes = [1, 256], strides = [1, 1]} : vector<9x256xf32> to vector<1x256xf32>
    %21 = vector.broadcast %20 : vector<1x256xf32> to vector<4x256xf32>
    %22 = arith.mulf %19, %21 : vector<4x256xf32>
    %c241_i32 = arith.constant 241 : i32
    %23 = tpu.dynamic_rotate %1 by %c241_i32 dim 1 : vector<4x256xf32>, i32 -> vector<4x256xf32>
    %24 = vector.extract_strided_slice %2 {offsets = [6, 0], sizes = [1, 256], strides = [1, 1]} : vector<9x256xf32> to vector<1x256xf32>
    %25 = vector.broadcast %24 : vector<1x256xf32> to vector<4x256xf32>
    %26 = arith.mulf %23, %25 : vector<4x256xf32>
    %c240_i32 = arith.constant 240 : i32
    %27 = tpu.dynamic_rotate %1 by %c240_i32 dim 1 : vector<4x256xf32>, i32 -> vector<4x256xf32>
    %28 = vector.extract_strided_slice %2 {offsets = [7, 0], sizes = [1, 256], strides = [1, 1]} : vector<9x256xf32> to vector<1x256xf32>
    %29 = vector.broadcast %28 : vector<1x256xf32> to vector<4x256xf32>
    %30 = arith.mulf %27, %29 : vector<4x256xf32>
    %c239_i32 = arith.constant 239 : i32
    %31 = tpu.dynamic_rotate %1 by %c239_i32 dim 1 : vector<4x256xf32>, i32 -> vector<4x256xf32>
    %32 = vector.extract_strided_slice %2 {offsets = [8, 0], sizes = [1, 256], strides = [1, 1]} : vector<9x256xf32> to vector<1x256xf32>
    %33 = vector.broadcast %32 : vector<1x256xf32> to vector<4x256xf32>
    %34 = arith.mulf %31, %33 : vector<4x256xf32>
    %35 = tpu.concatenate %6, %10, %14, %18, %1, %22, %26, %30, %34 in 0 : vector<4x256xf32>, vector<4x256xf32>, vector<4x256xf32>, vector<4x256xf32>, vector<4x256xf32>, vector<4x256xf32>, vector<4x256xf32>, vector<4x256xf32>, vector<4x256xf32> -> vector<36x256xf32>
    %c0_4 = arith.constant 0 : index
    %c0_5 = arith.constant 0 : index
    %36 = vector.load %arg2[%c0_4, %c0_5] : memref<4x36xf32, #tpu.memory_space<vmem>>, vector<4x36xf32>
    %cst = arith.constant dense<0.000000e+00> : vector<4x256xf32>
    %37 = tpu.matmul %36, %35, %cst {dimension_numbers = #tpu.dot_dimension_numbers<[1], [0], [0], [1], [0, 0, 1, 1], [], []>} : vector<4x36xf32>, vector<36x256xf32>, vector<4x256xf32> -> vector<4x256xf32>
    %38 = arith.addf %1, %37 : vector<4x256xf32>
    %c0_6 = arith.constant 0 : index
    %c0_7 = arith.constant 0 : index
    %39 = vector.load %arg3[%c0_6, %c0_7] : memref<4x1xf32, #tpu.memory_space<vmem>>, vector<4x1xf32>
    %40 = vector.broadcast %39 : vector<4x1xf32> to vector<4x256xf32>
    %41 = arith.addf %38, %40 : vector<4x256xf32>
    %c0_8 = arith.constant 0 : index
    %c0_9 = arith.constant 0 : index
    %c0_10 = arith.constant 0 : index
    %42 = vector.load %arg5[%c0_8, %c0_9, %c0_10] : memref<1x4x256xf32, #tpu.memory_space<vmem>>, vector<1x4x256xf32>
    %43 = vector.shape_cast %42 : vector<1x4x256xf32> to vector<4x256xf32>
    %44 = vector.shape_cast %41 : vector<4x256xf32> to vector<1x4x256xf32>
    tpu.vector_store %arg5[%c0_8, %c0_9, %c0_10], %44 {strides = array<i32>} : memref<1x4x256xf32, #tpu.memory_space<vmem>>, vector<1x4x256xf32>,
    return
  }
  func.func @transform_0(%arg0: i32) -> (i32, i32, i32) {
    %c0_i32 = arith.constant 0 : i32
    %c0_i32_0 = arith.constant 0 : i32
    %c0_i32_1 = arith.constant 0 : i32
    return %arg0, %c0_i32, %c0_i32_0 : i32, i32, i32
  }
  func.func @transform_1(%arg0: i32) -> (i32, i32) {
    %c0_i32 = arith.constant 0 : i32
    %c0_i32_0 = arith.constant 0 : i32
    %c0_i32_1 = arith.constant 0 : i32
    return %c0_i32, %c0_i32_0 : i32, i32
  }
  func.func @transform_2(%arg0: i32) -> (i32, i32) {
    %c0_i32 = arith.constant 0 : i32
    %c0_i32_0 = arith.constant 0 : i32
    %c0_i32_1 = arith.constant 0 : i32
    return %c0_i32, %c0_i32_0 : i32, i32
  }
  func.func @transform_3(%arg0: i32) -> (i32, i32) {
    %c0_i32 = arith.constant 0 : i32
    %c0_i32_0 = arith.constant 0 : i32
    %c0_i32_1 = arith.constant 0 : i32
    return %c0_i32, %c0_i32_0 : i32, i32
  }
  func.func @transform_4(%arg0: i32) -> (i32, i32, i32) {
    %c0_i32 = arith.constant 0 : i32
    %c0_i32_0 = arith.constant 0 : i32
    %c0_i32_1 = arith.constant 0 : i32
    return %arg0, %c0_i32, %c0_i32_0 : i32, i32, i32
  }
}

</mosaic_0001>

<bundles_post_ra>
// kernel: tpu_custom_call.1
= control target key start
LH: loop header
LB: loop body
LE: loop exit
PB: predicated region body
PF: predicated region fallthrough
CT: control target
= control target key end

     0   :  { %9 = vsyncpa [#allocation3], 0  ;;  %s1166_s0 = inlined_call_operand.hbm [shape: f32[2,4,256], index: 0, kind: input, shape index: {}]   ;;  %s1167_s1 = inlined_call_operand.vmem [shape: f32[4,36], index: 1, kind: input, shape index: {}]   ;;  %s1168_s2 = inlined_call_operand.vmem [shape: f32[4,1], index: 2, kind: input, shape index: {}]   ;;  %s1169_s3 = inlined_call_operand.hbm [shape: f32[9,256], index: 3, kind: input, shape index: {}]   ;;  %s1170_s4 = inlined_call_operand.hbm [shape: f32[2,4,256], index: 4, kind: output, shape index: {}]  }
   0x1   :  { %11 = vsyncpa [#allocation3 + $0x1], 0 }
   0x2   :  { %12 = vsyncpa [#allocation6], 0 }
   0x3   :  { %13 = vsyncpa [#allocation4], 0 }
   0x4   :  { %15 = vsyncpa [#allocation4 + $0x1], 0  ;;  %s879_s15 = smov 0   ;;  %s881_s16 = smov 0  }
   0x5   :  { %s883_s17 = smov 0   ;;  %s885_s18 = smov 0  }
   0x6 LB: > { %s900_s19 = sadd.s32 4294967295, %s836_s18   ;;  %s605_s20 = sadd.s32 4294967294, %s836_s18   ;;  %s836_s18 = sphi %s885_s18, %s1190_s18   ;;  %s832_s17 = sphi %s883_s17, %s1189_s17   ;;  %s828_s16 = sphi %s881_s16, %s1188_s16   ;;  %s824_s15 = sphi %s879_s15, %s1187_s15  }
   0x7   : > { %p41_p0 = scmp.ne.s32.totalorder %s828_s16, %s824_s15  ;;  %p1171_p1 = scmp.eq.s32.totalorder %s900_s19, 0 }
   0x8   : > { %p134_p3 = scmp.eq.s32.totalorder %s605_s20, 1  ;;  %p606_p5 = scmp.ge.s32.totalorder %s836_s18, 1 }
   0x9   : > { %p909_p4 = por %p1171_p1, %p41_p0  ;;  %p141_p7 = scmp.lt.s32.totalorder %s836_s18, 3 }
   0xa   : > { %p914_p6 = por %p134_p3, %p41_p0  ;;  %s838_s24 = smov [#allocation5]  }
   0xb   : > { %s1174_s21 = scalar_select %p909_p4, 1, 0 }
   0xc   : > { %s1175_s22 = scalar_select %p914_p6, 1, 0 }
   0xd   : > { %p919_p8 = pnand %p606_p5, %p141_p7  ;;  %s159_s25 = sshll.u32 %s838_s24, 4  ;;  %s923_s25 = int_to_ptr.vmem [resolvable:$true] %s159_s25 }
   0xe   : > { %s935_s27 = sadd.s32 1, %s836_s18   ;;  %s28_s28 = sadd.s32 1, %s832_s17 }
   0xf   : > { %s1176_s23 = scalar_select %p919_p8, 1, 0 }
  0x10   : > { %p644_p9 = pneg %p919_p8  ;;  %s25_s29 = ssub.s32 %s836_s18, %s935_s27 }
  0x11   : > { %s708_s6 = scalar_lea.hbm %s1169_s3, 512 }
  0x12   : > { %p930_p11 = pnand %p644_p9, %p1171_p1  ;;  %p709_p12 = scmp.ne.s32.totalorder %s1169_s3, %s708_s6 }
  0x13   : > { %p715_p5 = scmp.lt.u32.totalorder %s708_s6, %s1169_s3 }
  0x14   : > { %p710_p13 = pneg %p930_p11 }
  0x16   : > { %p711_p0 = pnand %p710_p13, %p709_p12 }
  0x18   : > { %p712_p3 = pneg %p711_p0 }
  0x1a   : > { %p717_p7 = pnand %p715_p5, %p712_p3 }
  0x1c   : > { %720 = shalt.err (!%p717_p7)
}
  0x1d   : > { %s721_s11 = scalar_lea.vmem %s923_s25, 512  ;;  %p729_p2 = scmp.lt.s32.totalorder %s923_s25, %s923_s25 }
  0x1e   : > { %p722_p9 = scmp.ne.s32.totalorder %s923_s25, %s721_s11  ;;  %p730_p6 = scmp.lt.s32.totalorder %s721_s11, %s721_s11 }
  0x20   : > { %p724_p10 = pnand %p722_p9, %p710_p13  ;;  %p731_p4 = por %p730_p6, %p729_p2 }
  0x22   : > { %p725_p1 = pneg %p724_p10 }
  0x24   : > { %p732_p8 = pnand %p731_p4, %p725_p1 }
  0x26   : > { %735 = shalt.err (!%p732_p8)
}
  0x27   : > { %s839_s12 = smov 256   ;;  %s840_s13 = smov 16  }
  0x28   : > { %647 = dma.hbm_to_vmem [thread:$0]  (!%p930_p11), %s1169_s3, 512, %s923_s25, [#allocation6], %s839_s12, %s839_s12, %s840_s13  }
  0x29   : > { %p26_p2 = scmp.eq.s32.totalorder %s25_s29, 0  ;;  %p35_p1 = scmp.ne.s32.totalorder %s832_s17, %s828_s16 }
  0x2a   : > { %p36_p4 = scmp.eq.s32.totalorder %s836_s18, 0  ;;  %p657_p6 = scmp.lt.s32.totalorder %s836_s18, 2 }
  0x2b   : > { %s966_s24 = scalar_select %p26_p2, %s832_s17, %s28_s28  }
  0x2c   : > { %p37_p8 = por %p36_p4, %p35_p1  ;;  %p1178_p10 = scmp.eq.s32.totalorder %s900_s19, 1 }
  0x2d   : > { %s173_s5 = sand.u32 1, %s832_s17   ;;  %s626_s6 = sshll.u32 %s836_s18, 7 }
  0x2e   : > { %p970_p12 = por %p1178_p10, %p35_p1  ;;  %s609_s7 = sshll.u32 %s173_s5, 3 }
  0x2f   : > { %s979_s9 = scalar_lea.hbm %s1166_s0, %s626_s6  ;;  %s177_s25 = scalar_lea.vmem [#allocation2], %s609_s7 }
  0x30   : > { %s185_s28 = sshll.u32 %s177_s25, 4  ;;  %p981_p11 = pnand %p657_p6, %p37_p8  ;;  %s985_s28 = int_to_ptr.vmem [resolvable:$true] %s185_s28 }
  0x31   : > { %s174_s10 = scalar_lea.sflag [#allocation3], %s173_s5  ;;  %s736_s11 = scalar_lea.hbm %s979_s9, 128 }
  0x32   : > { %p737_p13 = scmp.ne.s32.totalorder %s979_s9, %s736_s11  ;;  %p738_p0 = pneg %p981_p11 }
  0x33   : > { %s741_s14 = scalar_lea.hbm %s1166_s0, 256  ;;  %p742_p7 = scmp.lt.u32.totalorder %s979_s9, %s1166_s0 }
  0x34   : > { %p739_p3 = pnand %p738_p0, %p737_p13  ;;  %p743_p9 = scmp.lt.u32.totalorder %s741_s14, %s736_s11 }
  0x35   : > { %p745_p1 = scmp.lt.u32.totalorder %s736_s11, %s979_s9 }
  0x36   : > { %p740_p5 = pneg %p739_p3  ;;  %p744_p2 = por %p743_p9, %p742_p7 }
  0x38   : > { %p746_p4 = por %p745_p1, %p744_p2 }
  0x3a   : > { %p747_p6 = pnand %p746_p4, %p740_p5 }
  0x3c   : > { %750 = shalt.err (!%p747_p6)
}
  0x3d   : > { %s751_s5 = scalar_lea.vmem %s985_s28, 128  ;;  %s841_s7 = smov [#allocation2]  }
  0x3e   : > { %p752_p8 = scmp.ne.s32.totalorder %s985_s28, %s751_s5  ;;  %s756_s26 = sshll.u32 %s841_s7, 4  ;;  %s757_s26 = int_to_ptr.vmem [resolvable:$false] %s756_s26 }
  0x3f   : > { %s758_s8 = scalar_lea.vmem %s757_s26, 256  ;;  %p759_p3 = scmp.lt.s32.totalorder %s985_s28, %s757_s26 }
  0x40   : > { %p754_p10 = pnand %p752_p8, %p738_p0  ;;  %p760_p7 = scmp.lt.s32.totalorder %s758_s8, %s751_s5 }
  0x42   : > { %p755_p13 = pneg %p754_p10  ;;  %p761_p9 = por %p760_p7, %p759_p3 }
  0x44   : > { %p762_p2 = pnand %p761_p9, %p755_p13 }
  0x46   : > { %765 = shalt.err (!%p762_p2)
}
  0x47   : > { %651 = dma.hbm_to_vmem [thread:$0]  (!%p981_p11), %s979_s9, 128, %s985_s28, %s174_s10  }
  0x48   : > { %p1181_p5 = scmp.ne.s32.totalorder %s1176_s23, 0 }
  0x49   : > { %s1015_s25 = sand.u32 (!%p1181_p5), 1, %s828_s16   ;;  %p1182_p0 = scmp.ne.s32.totalorder (!%p1181_p5), %s1174_s21, 0 }
  0x4a   : > { %194 = sbr.rel (%p1181_p5) target bundleno = 470 (0x1d6), region = 36  ;;  %s613_s11 = sshll.u32 (!%p1181_p5), %s1015_s25, 3 }
  0x4b   : > { %s197_s12 = scalar_lea.sflag (!%p1181_p5), [#allocation3], %s1015_s25  ;;  %s200_s13 = scalar_lea.vmem (!%p1181_p5), [#allocation2], %s613_s11 }
  0x51   : > { %811 = dma.done.wait (%p1182_p0), %s197_s12, 128  }
  0x52   : > { %813 = vsyncadd (%p1182_p0), %s197_s12, 4294967168  ;;  %p1183_p11 = scmp.eq.s32.totalorder %s900_s19, 0 }
  0x54   : > { %815 = dma.done.wait (%p1183_p11), [#allocation6], 512   ;;  %p1184_p1 = pmov %p1183_p11 }
  0x55   : > { %v1029_v0 = vld [vmem:[%s200_s13] sm:$0xff]  ;;  %s842_s23 = smov 1   ;;  %s843_s9 = smov 16   ;;  %v848_v2 = vmov 0.0   ;;  %v850_v3 = vmov 0   ;;  %v241_v5 = vlaneseq  ;;  %v1059_v11 = vld [vmem:[#allocation5] sm:$0xff] }
  0x56   : > { %817 = vsyncadd (%p1184_p1), [#allocation6], 4294966784  ;;  %290 = vrot.lane.b32.xlu1 %v1029_v0, %s842_s23  ;;  %256 = vrot.lane.b32.xlu0 %v1029_v0, %s843_s9  ;;  %v1035_v1 = vcombine.high %v1029_v0, %v1029_v0  ;;  %s844_s21 = smov 17   ;;  %s845_s28 = smov 15   ;;  %v495_v4 = vld [vmem:[%s1168_s2] sm:$0xf] }
  0x57   : > { %s846_s29 = smov 127   ;;  %s847_s10 = smov 112   ;;  %483 = vmatprep.mubr.f32.mxu0 %v848_v2  ;;  %706 = vset.pattern.permute.xlu0 %v850_v3  ;;  %v1054_v6 = vshrl.u32 %v241_v5, 7  ;;  %v1056_v7 = vand.u32 127, %v241_v5  ;;  %v1061_v12 = vld [vmem:[#allocation5 + $0x8] sm:$0xff]  ;;  %vm399_vm4 = vcmask 1043456  }
  0x58   : > { %s849_s14 = smov 113   ;;  %s851_s20 = smov 111   ;;  %vm409_vm9 = vcmask 293888  }
  0x59   : > { %v299_v10 = vsub.s32 3, %v1054_v6  ;;  %v265_v13 = vsub.s32 1, %v1054_v6  ;;  %vm294_vm0 = vcmp.lt.s32.totalorder %v1056_v7, 1  ;;  %v248_v16 = vsub.s32 0, %v1054_v6  ;;  %s627_s8 = sshll.u32 %s900_s19, 7  ;;  %s228_s12 = scalar_lea.vmem [#allocation7], %s613_s11 }
  0x5a   : > { %237 = vrot.lane.b32.xlu0 %v1029_v0, %s844_s21  ;;  %292 = vrot.lane.b32.xlu1 %v1035_v1, %s842_s23  ;;  %vm260_vm1 = vcmp.lt.s32.totalorder %v1056_v7, 16  ;;  %v282_v19 = vsub.s32 2, %v1054_v6  ;;  %vm243_vm2 = vcmp.lt.s32.totalorder %v1056_v7, 17  ;;  %vm277_vm3 = vcmp.lt.s32.totalorder %v1056_v7, 15  ;;  %s525_s13 = sshll.u32 %s228_s12, 4  ;;  %s853_s19 = smov [#allocation7]   ;;  %s1124_s13 = int_to_ptr.vmem [resolvable:$true] %s525_s13 }
  0x5b   : > { %v300_v17 = vrot.slane %v1059_v11, %v299_v10  ;;  %v304_v18 = vrot.slane %v1061_v12, %v299_v10  ;;  %v266_v22 = vrot.slane %v1059_v11, %v265_v13  ;;  %v270_v23 = vrot.slane %v1061_v12, %v265_v13  ;;  %s770_s11 = sshll.u32 %s853_s19, 4  ;;  %s771_s11 = int_to_ptr.vmem [resolvable:$false] %s770_s11 }
  0x5c   : > { %v249_v24 = vrot.slane %v1059_v11, %v248_v16  ;;  %v253_v25 = vrot.slane %v1061_v12, %v248_v16  ;;  %v283_v34 = vrot.slane %v1059_v11, %v282_v19  ;;  %v287_v35 = vrot.slane %v1061_v12, %v282_v19  ;;  %p773_p10 = scmp.lt.s32.totalorder %s1124_s13, %s771_s11 }
  0x5d   : > { %v316_v38 = vsub.s32 5, %v1054_v6  ;;  %vm311_vm5 = vcmp.lt.s32.totalorder %v1056_v7, 127  ;;  %v350_v43 = vsub.s32 7, %v1054_v6  ;;  %vm345_vm6 = vcmp.lt.s32.totalorder %v1056_v7, 112 }
  0x5e   : > { %239 = vrot.lane.b32.xlu1 %v1035_v1, %s844_s21  ;;  %258 = vrot.lane.b32.xlu0 %v1035_v1, %s843_s9  ;;  %vm328_vm7 = vcmp.lt.s32.totalorder %v1056_v7, 113  ;;  %vm362_vm8 = vcmp.lt.s32.totalorder %v1056_v7, 111  ;;  %s1122_s21 = scalar_lea.hbm %s1170_s4, %s627_s8 }
  0x5f   : > { %v317_v52 = vrot.slane %v1059_v11, %v316_v38  ;;  %v321_v53 = vrot.slane %v1061_v12, %v316_v38  ;;  %v351_v2 = vrot.slane %v1059_v11, %v350_v43  ;;  %v355_v3 = vrot.slane %v1061_v12, %v350_v43 }
  0x62   : > { %275 = vrot.lane.b32.xlu1 %v1035_v1, %s845_s28  ;;  %273 = vrot.lane.b32.xlu0 %v1029_v0, %s845_s28  ;;  %s511_s28 = scalar_lea.sflag [#allocation4], %s1015_s25 }
  0x66   : > { %309 = vrot.lane.b32.xlu1 %v1035_v1, %s846_s29  ;;  %307 = vrot.lane.b32.xlu0 %v1029_v0, %s846_s29  ;;  %s766_s29 = scalar_lea.vmem %s1124_s13, 128 }
  0x67   : > { %p767_p4 = scmp.ne.s32.totalorder %s1124_s13, %s766_s29 }
  0x69   : > { %p768_p6 = pnand %p767_p4, %p970_p12 }
  0x6a   : > { %343 = vrot.lane.b32.xlu1 %v1035_v1, %s847_s10  ;;  %341 = vrot.lane.b32.xlu0 %v1029_v0, %s847_s10  ;;  %s772_s10 = scalar_lea.vmem %s771_s11, 256 }
  0x6b   : > { %p769_p8 = pneg %p768_p6  ;;  %p774_p13 = scmp.lt.s32.totalorder %s772_s10, %s766_s29 }
  0x6d   : > { %p775_p3 = por %p774_p13, %p773_p10 }
  0x6e   : > { %326 = vrot.lane.b32.xlu1 %v1035_v1, %s849_s14  ;;  %324 = vrot.lane.b32.xlu0 %v1029_v0, %s849_s14 }
  0x6f   : > { %p776_p7 = pnand %p775_p3, %p769_p8 }
  0x72   : > { %360 = vrot.lane.b32.xlu1 %v1035_v1, %s851_s20  ;;  %358 = vrot.lane.b32.xlu0 %v1029_v0, %s851_s20 }
  0x76   : > { %498 = vperm.xlu0 %706, %v495_v4   ;;  %v333_v4 = vsub.s32 6, %v1054_v6 }
  0xc8   : > { %v291_v8 = vpop.permute.xlu1 %290  ;;  %v257_v9 = vpop.permute.xlu0 %256 }
  0xcc   : > { %v238_v14 = vpop.permute.xlu0 %237  ;;  %v293_v15 = vpop.permute.xlu1 %292 }
  0xcd   : > { %v295_v20 = vsel %vm294_vm0, %v291_v8, %v293_v15  ;;  %v296_v21 = vsel %vm294_vm0, %v293_v15, %v291_v8 }
  0xce   : > { %v305_v28 = vmul.f32 %v300_v17, %v296_v21  ;;  %v306_v29 = vmul.f32 %v304_v18, %v295_v20  ;;  %v334_v17 = vrot.slane %v1059_v11, %v333_v4  ;;  %v338_v18 = vrot.slane %v1061_v12, %v333_v4 }
  0xd0   : > { %v240_v26 = vpop.permute.xlu1 %239  ;;  %v259_v27 = vpop.permute.xlu0 %258  ;;  %v383_v44 = vrot.slane %v305_v28, 4  ;;  %v384_v45 = vrot.slane %v306_v29, 4  ;;  %v617_v29 = vld [vmem:[#allocation5 + $0x18] ss:$0 sm:$0xff] }
  0xd1   : > { %v261_v30 = vsel %vm260_vm1, %v257_v9, %v259_v27  ;;  %v262_v31 = vsel %vm260_vm1, %v259_v27, %v257_v9  ;;  %v244_v36 = vsel %vm243_vm2, %v238_v14, %v240_v26  ;;  %v245_v37 = vsel %vm243_vm2, %v240_v26, %v238_v14 }
  0xd2   : > { %v271_v32 = vmul.f32 %v266_v22, %v262_v31  ;;  %v272_v33 = vmul.f32 %v270_v23, %v261_v30  ;;  %v254_v48 = vmul.f32 %v249_v24, %v245_v37  ;;  %v255_v49 = vmul.f32 %v253_v25, %v244_v36 }
  0xd4   : > { %v377_v39 = vrot.slane %v271_v32, 4  ;;  %v378_v40 = vrot.slane %v272_v33, 4  ;;  %v276_v41 = vpop.permute.xlu1 %275  ;;  %v274_v42 = vpop.permute.xlu0 %273 }
  0xd5   : > { %v278_v46 = vsel %vm277_vm3, %v274_v42, %v276_v41  ;;  %v279_v47 = vsel %vm277_vm3, %v276_v41, %v274_v42 }
  0xd6   : > { %v288_v50 = vmul.f32 %v283_v34, %v279_v47  ;;  %v289_v51 = vmul.f32 %v287_v35, %v278_v46  ;;  %v401_v56 = vsel %vm399_vm4, %v255_v49, %v378_v40  ;;  %v400_v58 = vsel %vm399_vm4, %v254_v48, %v377_v39  ;;  %v616_v35 = vld [vmem:[#allocation5 + $0x10] ss:$0 sm:$0xff] }
  0xd7   : > { %v852_v40 = vmov 839922192  }
  0xd8   : > { %v310_v54 = vpop.permute.xlu1 %309  ;;  %v308_v55 = vpop.permute.xlu0 %307  ;;  %v403_v57 = vsel %vm399_vm4, %v289_v51, %v384_v45  ;;  %v402_v59 = vsel %vm399_vm4, %v288_v50, %v383_v44  ;;  %v501_v41 = vunpack.c.l.s4 %v852_v40 }
  0xd9   : > { %v312_v60 = vsel %vm311_vm5, %v308_v55, %v310_v54  ;;  %v313_v61 = vsel %vm311_vm5, %v310_v54, %v308_v55  ;;  %v628_v62 = vpack.c.bf16 %v403_v57, %v401_v56  ;;  %v630_v63 = vpack.c.bf16 %v402_v59, %v400_v58 }
  0xda   : > { %v322_v5 = vmul.f32 %v317_v52, %v312_v60  ;;  %v323_v8 = vmul.f32 %v321_v53, %v313_v61  ;;  %v502_v42 = vunpack.c.0.s8 %v501_v41 }
  0xdb   : > { %629 = vmatprep.subr.bf16.mxu0 %v628_v62 }
  0xdc   : > { %v344_v9 = vpop.permute.xlu1 %343  ;;  %631 = vmatpush1.bf16.msra.mxu0 %v630_v63  ;;  %v342_v10 = vpop.permute.xlu0 %341  ;;  %v389_v19 = vrot.slane %v322_v5, 4  ;;  %v390_v20 = vrot.slane %v323_v8, 4  ;;  %v505_v43 = vsub.s32 %v502_v42, %v1054_v6 }
  0xdd   : > { %v346_v13 = vsel %vm345_vm6, %v342_v10, %v344_v9  ;;  %v347_v14 = vsel %vm345_vm6, %v344_v9, %v342_v10 }
  0xde   : > { %v356_v15 = vmul.f32 %v351_v2, %v346_v13  ;;  %v357_v16 = vmul.f32 %v355_v3, %v347_v14  ;;  %v405_v31 = vsel %vm399_vm4, %v1035_v1, %v390_v20  ;;  %v404_v32 = vsel %vm399_vm4, %v1029_v0, %v389_v19  ;;  %v408_v1 = vld [vmem:[%s1167_s1] sm:$0xf] }
  0xe0   : > { %v327_v21 = vpop.permute.xlu1 %326  ;;  %v325_v22 = vpop.permute.xlu0 %324  ;;  %v395_v25 = vrot.slane %v356_v15, 4  ;;  %v396_v26 = vrot.slane %v357_v16, 4 }
  0xe1   : > { %v329_v23 = vsel %vm328_vm7, %v325_v22, %v327_v21  ;;  %v330_v24 = vsel %vm328_vm7, %v327_v21, %v325_v22 }
  0xe2   : > { %v339_v27 = vmul.f32 %v334_v17, %v329_v23  ;;  %v340_v28 = vmul.f32 %v338_v18, %v330_v24 }
  0xe4   : > { %v361_v30 = vpop.permute.xlu1 %360  ;;  %v407_v11 = vsel %vm399_vm4, %v340_v28, %v396_v26  ;;  %v359_v12 = vpop.permute.xlu0 %358  ;;  %v406_v33 = vsel %vm399_vm4, %v339_v27, %v395_v25 }
  0xe5   : > { %v632_v34 = vpack.c.bf16 %v407_v11, %v405_v31  ;;  %v363_v7 = vsel %vm362_vm8, %v359_v12, %v361_v30  ;;  %v364_v36 = vsel %vm362_vm8, %v361_v30, %v359_v12  ;;  %v634_v37 = vpack.c.bf16 %v406_v33, %v404_v32 }
  0xe6   : > { %v374_v38 = vmul.f32 %v617_v29, %v364_v36  ;;  %v373_v39 = vmul.f32 %v616_v35, %v363_v7 }
  0xe7   : > { %633 = vmatprep.subr.bf16.mxu0 %v632_v34 }
  0xe8   : > { %635 = vmatpush1.bf16.msra.mxu0 %v634_v37 }
  0xe9   : > { %618 = vmatprep.subr.msk.mxu0 %vm399_vm4, %v374_v38 }
  0xec   : > { %619 = vmatpush1.msk.msra.mxu0 %vm399_vm4, %v373_v39 }
  0xed   : > { %620 = vmatmul.mubr.msk.f32.vlgmr.msra.gmra.mrb[0].mxu0 %vm409_vm9, %v408_v1 }
  0xf5   : > { %v499_v44 = vpop.permute.xlu0 %498 }
  0xf6   : > { %v506_v48 = vrot.slane %v499_v44, %v505_v43 }
 0x1c0   : > { %v485_v45 = vpop.f32.mrb[0].mxu0 }
 0x1c1   : > { %v487_v46 = vpop.f32.mrb[1].mxu0 }
 0x1c2   : > { %v492_v47 = vcombine.low %v485_v45, %v487_v46 }
 0x1c4   : > { %v494_v49 = vadd.f32 %v492_v47, %v1029_v0 }
 0x1c6   : > { %v508_v50 = vadd.f32 %v506_v48, %v494_v49 }
 0x1c8   : > { %509 = vst [vmem:[%s228_s12] sm:$0xff] %v508_v50 }
 0x1c9   : > { %779 = shalt.err (!%p776_p7)
}
 0x1ca   : > { %s780_s25 = scalar_lea.hbm %s1122_s21, 128  ;;  %s784_s6 = scalar_lea.hbm %s1170_s4, 256 }
 0x1cb   : > { %p781_p9 = scmp.ne.s32.totalorder %s1122_s21, %s780_s25  ;;  %p785_p0 = scmp.lt.u32.totalorder %s1122_s21, %s1170_s4 }
 0x1cc   : > { %p786_p11 = scmp.lt.u32.totalorder %s784_s6, %s780_s25  ;;  %p788_p4 = scmp.lt.u32.totalorder %s780_s25, %s1122_s21 }
 0x1cd   : > { %p782_p2 = pnand %p781_p9, %p970_p12 }
 0x1ce   : > { %p787_p1 = por %p786_p11, %p785_p0 }
 0x1cf   : > { %p783_p5 = pneg %p782_p2 }
 0x1d0   : > { %p789_p6 = por %p788_p4, %p787_p1 }
 0x1d2   : > { %p790_p8 = pnand %p789_p6, %p783_p5 }
 0x1d4   : > { %793 = shalt.err (!%p790_p8)
}
 0x1d5   : > { %642 = dma.vmem_to_hbm [thread:$0]  (%p970_p12), %s1124_s13, 128, %s1122_s21, %s511_s28  }
 0x1d6 PF: > { %s537_s26 = sand.u32 1, %s824_s15   ;;  %p1185_p10 = scmp.ne.s32.totalorder %s1175_s22, 0 }
 0x1d7   : > { %p1186_p13 = scmp.ge.s32.totalorder %s836_s18, 2  ;;  %s538_s8 = scalar_lea.sflag [#allocation4], %s537_s26 }
 0x1d9   : > { %p653_p3 = pnand %p1186_p13, %p1185_p10 }
 0x1db   : > { %819 = dma.done.wait (!%p653_p3), %s538_s8, 128  }
 0x1dc   : > { %821 = vsyncadd (!%p653_p3), %s538_s8, 4294967168  ;;  %p18_p7 = scmp.ge.s32.totalorder %s935_s27, 4   ;;  %s1187_s15 = smov %s828_s16 }
 0x1dd   : > { %s1188_s16 = smov %s832_s17  ;;  %s1189_s17 = smov %s966_s24 }
 0x1de   : > { %s1190_s18 = smov %s935_s27  ;;  %20 = sbr.rel (!%p18_p7) target bundleno = 6 (0x6), region = 85 }
 0x1e5   :  { %543 = vsyncpa [#allocation3], 1 }
 0x1e6   :  { %545 = vsyncpa [#allocation3 + $0x1], 1 }
 0x1e7   :  { %546 = vsyncpa [#allocation6], 1 }
 0x1e8   :  { %547 = vsyncpa [#allocation4], 1 }
 0x1e9   :  { %549 = vsyncpa [#allocation4 + $0x1], 1 }

</bundles_post_ra>
